<compile_context>
chip_gen: v5e
topology: v5e:2x2
jax: 0.10.0
libtpu: 0.0.40
codegen_flags: <defaults>
</compile_context>

<pallas_src>
import jax
import jax.numpy as jnp
from jax.experimental import pallas as pl
from jax.experimental.pallas import tpu as pltpu


def _mish_kernel(x_ref, o_ref):
    x = x_ref[...].astype(jnp.float32)
    # t = e^x, clamped like F.softplus(threshold=20) so nothing overflows;
    # for x > 20 the ratio below is exactly 1.0 in f32 and the result is x,
    # matching PyTorch's softplus threshold behaviour.
    t = jnp.exp(jnp.minimum(x, 20.0))
    n = t * (t + 2.0)
    d = n + 2.0
    # tanh(softplus(x)) == n / (n + 2).  Use EUP vrcp + one Newton step
    # (VALU has slack) -> f32-accurate, EUP work stays at exp + rcp.
    r = pl.reciprocal(d, approx=True)
    r = r * (2.0 - d * r)
    o_ref[...] = (x * (n * r)).astype(o_ref.dtype)


def _choose_layout(total, itemsize, target_block_bytes):
    """Pick (lanes, rows, block_rows, needs_pad) for a flat tensor of `total`."""
    # Largest lane width (multiple of 128) that divides total -> no pad/slice.
    lanes = None
    for cand in (1024, 512, 256, 128):
        if total % cand == 0:
            lanes = cand
            break
    needs_pad = lanes is None
    if needs_pad:
        lanes = 512
    rows = -(-total // lanes)  # ceil
    # Row-block sized for ~target_block_bytes per single VMEM buffer.
    block_rows = max(8, (target_block_bytes // (lanes * itemsize)) // 8 * 8)
    if block_rows >= rows:
        block_rows = rows  # single full-extent block along rows (legal shape)
    return lanes, rows, block_rows, needs_pad


def mish(x, *, target_block_bytes=2 * 1024 * 1024):
    """Pallas forward of Mish for an arbitrarily-shaped tensor."""
    shape, dtype = x.shape, x.dtype
    total = x.size
    itemsize = jnp.dtype(dtype).itemsize

    lanes, rows, block_rows, needs_pad = _choose_layout(
        total, itemsize, target_block_bytes)

    flat = x.reshape(-1)
    padded_total = rows * lanes
    if needs_pad and padded_total != total:
        # Only hit for sizes not divisible by 128 (rare for NCHW activations).
        flat = jnp.pad(flat, (0, padded_total - total))
    x2d = flat.reshape(rows, lanes)

    grid = (pl.cdiv(rows, block_rows),)  # ragged last block masked by Pallas

    out2d = pl.pallas_call(
        _mish_kernel,
        out_shape=jax.ShapeDtypeStruct((rows, lanes), dtype),
        grid_spec=pltpu.PrefetchScalarGridSpec(
            num_scalar_prefetch=0,
            grid=grid,
            in_specs=[pl.BlockSpec((block_rows, lanes), lambda i: (i, 0))],
            out_specs=pl.BlockSpec((block_rows, lanes), lambda i: (i, 0)),
        ),
        compiler_params=pltpu.CompilerParams(
            dimension_semantics=("parallel",),
            vmem_limit_bytes=32 * 1024 * 1024,
        ),
        cost_estimate=pl.CostEstimate(
            flops=8 * padded_total,
            transcendentals=2 * padded_total,
            bytes_accessed=2 * padded_total * itemsize,
        ),
    )(x2d)

    if needs_pad and padded_total != total:
        return out2d.reshape(-1)[:total].reshape(shape)
    return out2d.reshape(shape)


def _ref_mish(x):
    """Pure-JAX reference mirroring the PyTorch forward."""
    return x * jnp.tanh(jax.nn.softplus(x))


if __name__ == "__main__":
    key = jax.random.PRNGKey(0)
    k0, k1 = jax.random.split(key)

    # Main test: small NCHW activation; size divisible by 128 -> no pad path.
    B, C, H, W = 2, 4, 16, 16
    # Scale so both the linear (x >> 0) and saturated-negative regimes are hit.
    x = 5.0 * jax.random.normal(k0, (B, C, H, W), jnp.float32)

    out = jax.block_until_ready(mish(x))
    ref = _ref_mish(x)
    assert out.shape == x.shape and out.dtype == x.dtype
    assert jnp.allclose(out, ref, atol=1e-4, rtol=1e-4), "mismatch vs reference"

    # Ragged-size test exercising the minimal pad/slice fallback path.
    x2 = 5.0 * jax.random.normal(k1, (3, 5, 7, 11), jnp.float32)
    out2 = jax.block_until_ready(mish(x2))
    assert jnp.allclose(out2, _ref_mish(x2), atol=1e-4, rtol=1e-4), \
        "mismatch vs reference (ragged)"

    print("KERNEL_OK")
</pallas_src>

<mosaic_0001>
module attributes {stable_mosaic.version = 11 : i64} {
  func.func @_mish_kernel(%arg0: i32, %arg1: memref<2x1024xf32, #tpu.memory_space<vmem>>, %arg2: memref<2x1024xf32, #tpu.memory_space<vmem>>) attributes {dimension_semantics = [#tpu.dimension_semantics<parallel>], iteration_bounds = array<i64: 1>, scalar_prefetch = 0 : i64, scratch_operands = 0 : i64, tpu.core_type = #tpu.core_type<tc>, window_params = [{transform_indices = @transform_0, window_bounds = array<i64: 2, 1024>}, {transform_indices = @transform_1, window_bounds = array<i64: 2, 1024>}]} {
    %c0 = arith.constant 0 : index
    %c0_0 = arith.constant 0 : index
    %0 = vector.load %arg1[%c0, %c0_0] : memref<2x1024xf32, #tpu.memory_space<vmem>>, vector<2x1024xf32>
    %cst = arith.constant 2.000000e+01 : f32
    %1 = vector.broadcast %cst : f32 to vector<2x1024xf32>
    %2 = arith.minimumf %0, %1 : vector<2x1024xf32>
    %3 = math.exp %2 : vector<2x1024xf32>
    %cst_1 = arith.constant 2.000000e+00 : f32
    %4 = vector.broadcast %cst_1 : f32 to vector<2x1024xf32>
    %5 = arith.addf %3, %4 : vector<2x1024xf32>
    %6 = arith.mulf %3, %5 : vector<2x1024xf32>
    %cst_2 = arith.constant 2.000000e+00 : f32
    %7 = vector.broadcast %cst_2 : f32 to vector<2x1024xf32>
    %8 = arith.addf %6, %7 : vector<2x1024xf32>
    %9 = tpu.reciprocal %8 {approx = true} : vector<2x1024xf32> -> vector<2x1024xf32>
    %10 = arith.mulf %8, %9 : vector<2x1024xf32>
    %cst_3 = arith.constant 2.000000e+00 : f32
    %11 = vector.broadcast %cst_3 : f32 to vector<2x1024xf32>
    %12 = arith.subf %11, %10 : vector<2x1024xf32>
    %13 = arith.mulf %9, %12 : vector<2x1024xf32>
    %14 = arith.mulf %6, %13 : vector<2x1024xf32>
    %15 = arith.mulf %0, %14 : vector<2x1024xf32>
    %c0_4 = arith.constant 0 : index
    %c0_5 = arith.constant 0 : index
    %16 = vector.load %arg2[%c0_4, %c0_5] : memref<2x1024xf32, #tpu.memory_space<vmem>>, vector<2x1024xf32>
    tpu.vector_store %arg2[%c0_4, %c0_5], %15 {strides = array<i32>} : memref<2x1024xf32, #tpu.memory_space<vmem>>, vector<2x1024xf32>,
    return
  }
  func.func @transform_0(%arg0: i32) -> (i32, i32) {
    %c0_i32 = arith.constant 0 : i32
    %c0_i32_0 = arith.constant 0 : i32
    return %arg0, %c0_i32 : i32, i32
  }
  func.func @transform_1(%arg0: i32) -> (i32, i32) {
    %c0_i32 = arith.constant 0 : i32
    %c0_i32_0 = arith.constant 0 : i32
    return %arg0, %c0_i32 : i32, i32
  }
}

</mosaic_0001>

<bundles_post_ra>
// kernel: tpu_custom_call.1
= control target key start
LH: loop header
LB: loop body
LE: loop exit
PB: predicated region body
PF: predicated region fallthrough
CT: control target
= control target key end

     0   :  { %6 = vsyncpa [#allocation3], 0  ;;  %s148_s0 = inlined_call_operand.hbm [shape: f32[2,1024], index: 0, kind: input, shape index: {}]   ;;  %s149_s1 = inlined_call_operand.hbm [shape: f32[2,1024], index: 1, kind: output, shape index: {}]  }
   0x1   :  { %7 = vsyncpa [#allocation4], 0  ;;  %s13_s8 = sshll.u32 %s148_s0, 4  ;;  %s130_s9 = smov [#allocation2]   ;;  %s14_s8 = int_to_ptr.hbm [resolvable:$true] %s13_s8 }
   0x2   :  { %s15_s10 = sshll.u32 %s130_s9, 4  ;;  %s16_s10 = int_to_ptr.vmem [resolvable:$true] %s15_s10 }
   0x3   :  { %18 = dma.hbm_to_vmem [thread:$0]  %s14_s8, 256, %s16_s10, [#allocation3]  }
   0x4   :  { %126 = dma.done.wait [#allocation3], 256  }
   0x5   :  { %127 = vsyncadd [#allocation3], 4294967040  ;;  %v23_v0 = vld [vmem:[#allocation2] sm:$0xff]  ;;  %v24_v1 = vld [vmem:[#allocation2 + $0x8] sm:$0xff]  ;;  %s131_s0 = smov [#allocation5]   ;;  %s58_s14 = sshll.u32 %s149_s1, 4  ;;  %s59_s14 = int_to_ptr.hbm [resolvable:$true] %s58_s14 }
   0x6   :  { %v25_v2 = vmin.f32 %v23_v0, 20.0  ;;  %v26_v3 = vmin.f32 %v24_v1, 20.0  ;;  %s56_s11 = sshll.u32 %s131_s0, 4  ;;  %s57_s11 = int_to_ptr.vmem [resolvable:$true] %s56_s11 }
   0x8   :  { %v27_v4 = vmul.f32 1.442695, %v25_v2  ;;  %v29_v5 = vmul.f32 1.442695, %v26_v3 }
   0xa   :  { %70 = vpow2.f32 %v27_v4 }
   0xb   :  { %72 = vpow2.f32 %v29_v5 }
  0x10   :  { %v71_v6 = vpop.eup %70 }
  0x11   :  { %v73_v7 = vpop.eup %72  ;;  %v31_v8 = vadd.f32 2.0, %v71_v6 }
  0x12   :  { %v32_v9 = vadd.f32 2.0, %v73_v7 }
  0x13   :  { %v33_v10 = vmul.f32 %v71_v6, %v31_v8 }
  0x14   :  { %v34_v11 = vmul.f32 %v73_v7, %v32_v9 }
  0x15   :  { %v35_v12 = vadd.f32 2.0, %v33_v10 }
  0x16   :  { %v36_v13 = vadd.f32 2.0, %v34_v11 }
  0x17   :  { %74 = vrcp.f32 %v35_v12 }
  0x18   :  { %76 = vrcp.f32 %v36_v13 }
  0x1d   :  { %v75_v14 = vpop.eup %74 }
  0x1e   :  { %v77_v15 = vpop.eup %76  ;;  %v39_v16 = vmul.f32 %v75_v14, %v35_v12 }
  0x1f   :  { %v40_v17 = vmul.f32 %v77_v15, %v36_v13 }
  0x20   :  { %v41_v18 = vsub.f32 2.0, %v39_v16 }
  0x21   :  { %v42_v19 = vsub.f32 2.0, %v40_v17 }
  0x22   :  { %v43_v20 = vmul.f32 %v75_v14, %v41_v18 }
  0x23   :  { %v44_v21 = vmul.f32 %v77_v15, %v42_v19 }
  0x24   :  { %v45_v22 = vmul.f32 %v43_v20, %v33_v10 }
  0x25   :  { %v46_v23 = vmul.f32 %v44_v21, %v34_v11 }
  0x26   :  { %v47_v24 = vmul.f32 %v45_v22, %v23_v0 }
  0x27   :  { %v48_v25 = vmul.f32 %v46_v23, %v24_v1 }
  0x28   :  { %49 = vst [vmem:[#allocation5] sm:$0xff] %v47_v24 }
  0x29   :  { %50 = vst [vmem:[#allocation5 + $0x8] sm:$0xff] %v48_v25 }
  0x2a   :  { %61 = dma.vmem_to_hbm [thread:$0]  %s57_s11, 256, %s59_s14, [#allocation4]  }
  0x2b   :  { %128 = dma.done.wait [#allocation4], 256  }
  0x2c   :  { %129 = vsyncadd [#allocation4], 4294967040 }
  0x2d   :  { %66 = vsyncpa [#allocation3], 1 }
  0x2e   :  { %67 = vsyncpa [#allocation4], 1 }

</bundles_post_ra>
